<compile_context>
chip_gen: v7x
topology: tpu7x:2x2x1
jax: 0.10.0
libtpu: 0.0.40
codegen_flags: <defaults>
</compile_context>

<pallas_src>
import functools

import jax
import jax.numpy as jnp
from jax import lax
from jax.experimental import pallas as pl
from jax.experimental.pallas import tpu as pltpu

# stand-ins for the `dnc` config the PyTorch module references
COMPRESSION_RATIO = 0.5
NUM_GROUPS = 2
GN_EPS = 1e-5


def _round_up(x, m):
    return ((x + m - 1) // m) * m


# ----------------------------- kernel 1: GroupNorm + ReLU -------------------
def _gn_relu_kernel(x_ref, g_ref, b_ref, o_ref):
    # x_ref block: [Cg, H*W]  (one batch element, one group; lanes = spatial)
    x = x_ref[...].astype(jnp.float32)
    n_elems = x.shape[0] * x.shape[1]
    # One-pass statistics: var = E[x^2] - E[x]^2 (saves a full VPU sweep).
    s = jnp.sum(x)
    ss = jnp.sum(x * x)
    mean = s / n_elems
    var = jnp.maximum(ss / n_elems - mean * mean, 0.0)
    inv = lax.rsqrt(var + GN_EPS)                       # EUP slot (free-ish)
    y = (x - mean) * inv * g_ref[...] + b_ref[...]      # per-channel affine
    o_ref[...] = jnp.maximum(y, 0.0).astype(o_ref.dtype)


def groupnorm_relu(x, gamma, beta):
    """x: [N, C, H, W] (NCHW, f32) -> GroupNorm(NUM_GROUPS)+ReLU, bf16 NCHW."""
    N, C, H, W = x.shape
    G = NUM_GROUPS
    assert C % G == 0
    Cg = C // G
    HW = H * W
    xg = x.reshape(N, G, Cg, HW)                         # zero-copy NCHW view
    gamma_g = gamma.astype(jnp.float32).reshape(G, Cg, 1)
    beta_g = beta.astype(jnp.float32).reshape(G, Cg, 1)
    out = pl.pallas_call(
        _gn_relu_kernel,
        out_shape=jax.ShapeDtypeStruct((N, G, Cg, HW), jnp.bfloat16),
        grid=(N, G),
        in_specs=[
            pl.BlockSpec((None, None, Cg, HW), lambda n, g: (n, g, 0, 0)),
            pl.BlockSpec((None, Cg, 1), lambda n, g: (g, 0, 0)),
            pl.BlockSpec((None, Cg, 1), lambda n, g: (g, 0, 0)),
        ],
        out_specs=pl.BlockSpec((None, None, Cg, HW), lambda n, g: (n, g, 0, 0)),
        compiler_params=pltpu.CompilerParams(
            dimension_semantics=("parallel", "parallel")),  # v7x: 2 TCs
    )(xg, gamma_g, beta_g)
    return out.reshape(N, C, H, W)


# ----------------------------- kernel 2: tiled conv-as-matmul ---------------
def _matmul_bias_kernel(a_ref, w_ref, b_ref, o_ref, acc_ref):
    k = pl.program_id(2)

    @pl.when(k == 0)
    def _():
        acc_ref[...] = jnp.zeros_like(acc_ref)

    acc_ref[...] += jnp.dot(a_ref[...], w_ref[...],
                            preferred_element_type=jnp.float32)

    @pl.when(k == pl.num_programs(2) - 1)
    def _():
        o_ref[...] = (acc_ref[...] + b_ref[...]).astype(o_ref.dtype)


def matmul_bias(a, w, b, *, tm=256, tn=256, tk=512):
    """a: [M, K] bf16, w: [K, Nc] bf16, b: [Nc] f32 -> [M, Nc] f32.

    Tiled/pipelined MXU matmul: bf16 operands, f32 accumulation, bias added in
    the epilogue tile only.  All dims zero-padded to lane/sublane friendly
    multiples so output stores are unmasked (lane-dense).
    """
    M, K = a.shape
    Nc = w.shape[1]
    tm = min(tm, _round_up(M, 128))
    tn = min(tn, _round_up(Nc, 128))     # 256-wide N tiles on v6e/v7x when big
    tk = min(tk, _round_up(K, 128))
    Mp, Kp, Np = _round_up(M, tm), _round_up(K, tk), _round_up(Nc, tn)

    a_p = jnp.pad(a, ((0, Mp - M), (0, Kp - K)))
    w_p = jnp.pad(w, ((0, Kp - K), (0, Np - Nc)))
    b_p = jnp.pad(b.astype(jnp.float32), (0, Np - Nc)).reshape(1, Np)

    grid = (Mp // tm, Np // tn, Kp // tk)
    # NOTE: on v5e (lowest HBM BW) the A spec could use pipeline_mode=
    # pl.Buffered(3) if the K-stream DMA is exposed; default double-buffering
    # is kept here for portability.
    out = pl.pallas_call(
        _matmul_bias_kernel,
        out_shape=jax.ShapeDtypeStruct((Mp, Np), jnp.float32),
        grid_spec=pltpu.PrefetchScalarGridSpec(
            num_scalar_prefetch=0,
            grid=grid,
            in_specs=[
                pl.BlockSpec((tm, tk), lambda i, j, k: (i, k)),
                pl.BlockSpec((tk, tn), lambda i, j, k: (k, j)),
                pl.BlockSpec((1, tn), lambda i, j, k: (0, j)),
            ],
            out_specs=pl.BlockSpec((tm, tn), lambda i, j, k: (i, j)),
            scratch_shapes=[pltpu.VMEM((tm, tn), jnp.float32)],
        ),
        compiler_params=pltpu.CompilerParams(
            dimension_semantics=("parallel", "parallel", "arbitrary"),
            vmem_limit_bytes=32 * 1024 * 1024,   # safe on v7x (64 MiB phys)
        ),
    )(a_p, w_p, b_p)
    return out[:M, :Nc]


# ----------------------------- glue: im2col / pixel shuffle -----------------
def _im2col_3x3_stride2_pad1(y):
    """y: [N, C, H, W] (bf16) -> ([N*Ho*Wo, C*9] bf16, Ho, Wo), OIHW flatten."""
    N, C, H, W = y.shape
    Ho = (H + 2 - 3) // 2 + 1
    Wo = (W + 2 - 3) // 2 + 1
    yp = jnp.pad(y, ((0, 0), (0, 0), (1, 1), (1, 1)))
    cols = []
    for ky in range(3):
        for kx in range(3):
            cols.append(yp[:, :, ky:ky + 2 * Ho:2, kx:kx + 2 * Wo:2])  # [N,C,Ho,Wo]
    patches = jnp.stack(cols, axis=2)            # [N, C, 9, Ho, Wo]
    patches = patches.transpose(0, 3, 4, 1, 2)   # [N, Ho, Wo, C, 9]
    return patches.reshape(N * Ho * Wo, C * 9), Ho, Wo


# ----------------------------- full forward passes --------------------------
def transition_layer_downsample(x, params):
    """GroupNorm -> ReLU -> Conv2d(C, outC, 3, stride=2, padding=1)."""
    gamma, beta = params["gamma"], params["beta"]
    w, b = params["conv_w"], params["conv_b"]        # w: [outC, C, 3, 3]
    N, C, H, W = x.shape
    y = groupnorm_relu(x, gamma, beta)               # bf16 NCHW
    a, Ho, Wo = _im2col_3x3_stride2_pad1(y)          # bf16 [M, C*9]
    Co = w.shape[0]
    wm = w.reshape(Co, C * 9).T.astype(jnp.bfloat16)  # [C*9, outC]
    out = matmul_bias(a, wm, b)                      # f32 [N*Ho*Wo, outC]
    return out.reshape(N, Ho, Wo, Co).transpose(0, 3, 1, 2)


def transition_layer_upsample(x, params):
    """GroupNorm -> ReLU -> Conv2d(C, 4*outC, 1) -> PixelShuffle(2)."""
    gamma, beta = params["gamma"], params["beta"]
    w, b = params["conv_w"], params["conv_b"]        # w: [4*outC, C, 1, 1]
    N, C, H, W = x.shape
    y = groupnorm_relu(x, gamma, beta)               # bf16 NCHW
    a = y.transpose(0, 2, 3, 1).reshape(N * H * W, C)  # single bf16 transpose
    C4 = w.shape[0]
    wm = w.reshape(C4, C).T.astype(jnp.bfloat16)     # [C, 4*outC]
    out = matmul_bias(a, wm, b)                      # f32 [N*H*W, 4*outC]
    out = out.reshape(N, H, W, C4)
    # PixelShuffle(2) directly from NHWC -> NCHW
    Co = C4 // 4
    t = out.reshape(N, H, W, Co, 2, 2).transpose(0, 3, 1, 4, 2, 5)
    return t.reshape(N, Co, 2 * H, 2 * W)


# ----------------------------- pure-JAX references (for checking) -----------
def _gn_relu_ref(x, gamma, beta):
    N, C, H, W = x.shape
    xg = x.reshape(N, NUM_GROUPS, C // NUM_GROUPS, H, W)
    mean = xg.mean(axis=(2, 3, 4), keepdims=True)
    var = ((xg - mean) ** 2).mean(axis=(2, 3, 4), keepdims=True)
    xn = ((xg - mean) / jnp.sqrt(var + GN_EPS)).reshape(N, C, H, W)
    return jnp.maximum(xn * gamma.reshape(1, C, 1, 1) + beta.reshape(1, C, 1, 1),
                       0.0)


def _ref_downsample(x, params):
    y = _gn_relu_ref(x, params["gamma"], params["beta"]).astype(jnp.bfloat16)
    w = params["conv_w"].astype(jnp.bfloat16)
    out = lax.conv_general_dilated(
        y, w, window_strides=(2, 2), padding=((1, 1), (1, 1)),
        dimension_numbers=("NCHW", "OIHW", "NCHW"),
        preferred_element_type=jnp.float32)
    return out + params["conv_b"].reshape(1, -1, 1, 1)


def _ref_upsample(x, params):
    y = _gn_relu_ref(x, params["gamma"], params["beta"]).astype(jnp.bfloat16)
    w = params["conv_w"].astype(jnp.bfloat16)
    out = lax.conv_general_dilated(
        y, w, window_strides=(1, 1), padding=((0, 0), (0, 0)),
        dimension_numbers=("NCHW", "OIHW", "NCHW"),
        preferred_element_type=jnp.float32)
    out = out + params["conv_b"].reshape(1, -1, 1, 1)
    N, C4, H, W = out.shape
    Co = C4 // 4
    t = out.reshape(N, Co, 2, 2, H, W).transpose(0, 1, 4, 2, 5, 3)
    return t.reshape(N, Co, 2 * H, 2 * W)


if __name__ == "__main__":
    key = jax.random.PRNGKey(0)
    k1, k2, k3, k4, k5, k6, k7 = jax.random.split(key, 7)

    N, C, H, W = 2, 4, 16, 16
    out_ch = int(C * COMPRESSION_RATIO)              # = 2

    x = jax.random.normal(k1, (N, C, H, W), jnp.float32)

    params_down = dict(
        gamma=1.0 + 0.1 * jax.random.normal(k2, (C,), jnp.float32),
        beta=0.1 * jax.random.normal(k3, (C,), jnp.float32),
        conv_w=0.1 * jax.random.normal(k4, (out_ch, C, 3, 3), jnp.float32),
        conv_b=0.1 * jax.random.normal(k5, (out_ch,), jnp.float32),
    )
    params_up = dict(
        gamma=params_down["gamma"],
        beta=params_down["beta"],
        conv_w=0.1 * jax.random.normal(k6, (4 * out_ch, C, 1, 1), jnp.float32),
        conv_b=0.1 * jax.random.normal(k7, (4 * out_ch,), jnp.float32),
    )

    out_down = jax.block_until_ready(transition_layer_downsample(x, params_down))
    out_up = jax.block_until_ready(transition_layer_upsample(x, params_up))

    assert out_down.shape == (N, out_ch, H // 2, W // 2), out_down.shape
    assert out_up.shape == (N, out_ch, 2 * H, 2 * W), out_up.shape

    # Check vs bf16-operand-matched XLA references (MXU runs bf16 x bf16 -> f32)
    ref_d = _ref_downsample(x, params_down)
    ref_u = _ref_upsample(x, params_up)
    err_d = float(jnp.max(jnp.abs(out_down - ref_d)))
    err_u = float(jnp.max(jnp.abs(out_up - ref_u)))
    assert jnp.allclose(out_down, ref_d, atol=2e-2, rtol=2e-2), err_d
    assert jnp.allclose(out_up, ref_u, atol=2e-2, rtol=2e-2), err_u

    print("KERNEL_OK")
</pallas_src>

<mosaic_0001>
module attributes {stable_mosaic.version = 11 : i64} {
  func.func @_gn_relu_kernel(%arg0: i32, %arg1: i32, %arg2: memref<1x1x2x256xf32, #tpu.memory_space<vmem>>, %arg3: memref<1x2x1xf32, #tpu.memory_space<vmem>>, %arg4: memref<1x2x1xf32, #tpu.memory_space<vmem>>, %arg5: memref<1x1x2x256xbf16, #tpu.memory_space<vmem>>) attributes {dimension_semantics = [#tpu.dimension_semantics<parallel>, #tpu.dimension_semantics<parallel>], iteration_bounds = array<i64: 2, 2>, scalar_prefetch = 0 : i64, scratch_operands = 0 : i64, tpu.core_type = #tpu.core_type<tc>, window_params = [{transform_indices = @transform_0, window_bounds = array<i64: 1, 1, 2, 256>}, {transform_indices = @transform_1, window_bounds = array<i64: 1, 2, 1>}, {transform_indices = @transform_2, window_bounds = array<i64: 1, 2, 1>}, {transform_indices = @transform_3, window_bounds = array<i64: 1, 1, 2, 256>}]} {
    %c0 = arith.constant 0 : index
    %c0_0 = arith.constant 0 : index
    %c0_1 = arith.constant 0 : index
    %c0_2 = arith.constant 0 : index
    %0 = vector.load %arg2[%c0, %c0_0, %c0_1, %c0_2] : memref<1x1x2x256xf32, #tpu.memory_space<vmem>>, vector<1x1x2x256xf32>
    %1 = vector.shape_cast %0 : vector<1x1x2x256xf32> to vector<2x256xf32>
    %2 = vector.shape_cast %1 : vector<2x256xf32> to vector<1x2x256xf32>
    %cst = arith.constant dense<0.000000e+00> : vector<1xf32>
    %3 = vector.multi_reduction <add>, %2, %cst [1, 2] : vector<1x2x256xf32> to vector<1xf32>
    %4 = vector.shape_cast %3 : vector<1xf32> to vector<1x1x1xf32>
    %5 = vector.extract %4[0, 0, 0] : f32 from vector<1x1x1xf32>
    %6 = arith.mulf %1, %1 : vector<2x256xf32>
    %7 = vector.shape_cast %6 : vector<2x256xf32> to vector<1x2x256xf32>
    %cst_3 = arith.constant dense<0.000000e+00> : vector<1xf32>
    %8 = vector.multi_reduction <add>, %7, %cst_3 [1, 2] : vector<1x2x256xf32> to vector<1xf32>
    %9 = vector.shape_cast %8 : vector<1xf32> to vector<1x1x1xf32>
    %10 = vector.extract %9[0, 0, 0] : f32 from vector<1x1x1xf32>
    %cst_4 = arith.constant 5.120000e+02 : f32
    %11 = arith.divf %5, %cst_4 : f32
    %cst_5 = arith.constant 5.120000e+02 : f32
    %12 = arith.divf %10, %cst_5 : f32
    %13 = arith.mulf %11, %11 : f32
    %14 = arith.subf %12, %13 : f32
    %cst_6 = arith.constant 0.000000e+00 : f32
    %15 = arith.maximumf %14, %cst_6 : f32
    %cst_7 = arith.constant 9.99999974E-6 : f32
    %16 = arith.addf %15, %cst_7 : f32
    %17 = math.rsqrt %16 : f32
    %18 = vector.broadcast %11 : f32 to vector<2x256xf32>
    %19 = arith.subf %1, %18 : vector<2x256xf32>
    %20 = vector.broadcast %17 : f32 to vector<2x256xf32>
    %21 = arith.mulf %19, %20 : vector<2x256xf32>
    %c0_8 = arith.constant 0 : index
    %c0_9 = arith.constant 0 : index
    %c0_10 = arith.constant 0 : index
    %22 = vector.load %arg3[%c0_8, %c0_9, %c0_10] : memref<1x2x1xf32, #tpu.memory_space<vmem>>, vector<1x2x1xf32>
    %23 = vector.shape_cast %22 : vector<1x2x1xf32> to vector<2x1xf32>
    %24 = vector.broadcast %23 : vector<2x1xf32> to vector<2x256xf32>
    %25 = arith.mulf %21, %24 : vector<2x256xf32>
    %c0_11 = arith.constant 0 : index
    %c0_12 = arith.constant 0 : index
    %c0_13 = arith.constant 0 : index
    %26 = vector.load %arg4[%c0_11, %c0_12, %c0_13] : memref<1x2x1xf32, #tpu.memory_space<vmem>>, vector<1x2x1xf32>
    %27 = vector.shape_cast %26 : vector<1x2x1xf32> to vector<2x1xf32>
    %28 = vector.broadcast %27 : vector<2x1xf32> to vector<2x256xf32>
    %29 = arith.addf %25, %28 : vector<2x256xf32>
    %cst_14 = arith.constant 0.000000e+00 : f32
    %30 = vector.broadcast %cst_14 : f32 to vector<2x256xf32>
    %31 = arith.maximumf %29, %30 : vector<2x256xf32>
    %32 = arith.truncf %31 : vector<2x256xf32> to vector<2x256xbf16>
    %c0_15 = arith.constant 0 : index
    %c0_16 = arith.constant 0 : index
    %c0_17 = arith.constant 0 : index
    %c0_18 = arith.constant 0 : index
    %33 = vector.load %arg5[%c0_15, %c0_16, %c0_17, %c0_18] : memref<1x1x2x256xbf16, #tpu.memory_space<vmem>>, vector<1x1x2x256xbf16>
    %34 = vector.shape_cast %33 : vector<1x1x2x256xbf16> to vector<2x256xbf16>
    %35 = vector.shape_cast %32 : vector<2x256xbf16> to vector<1x1x2x256xbf16>
    tpu.vector_store %arg5[%c0_15, %c0_16, %c0_17, %c0_18], %35 {strides = array<i32>} : memref<1x1x2x256xbf16, #tpu.memory_space<vmem>>, vector<1x1x2x256xbf16>,
    return
  }
  func.func @transform_0(%arg0: i32, %arg1: i32) -> (i32, i32, i32, i32) {
    %c0_i32 = arith.constant 0 : i32
    %c0_i32_0 = arith.constant 0 : i32
    %c0_i32_1 = arith.constant 0 : i32
    return %arg0, %arg1, %c0_i32, %c0_i32_0 : i32, i32, i32, i32
  }
  func.func @transform_1(%arg0: i32, %arg1: i32) -> (i32, i32, i32) {
    %c0_i32 = arith.constant 0 : i32
    %c0_i32_0 = arith.constant 0 : i32
    %c0_i32_1 = arith.constant 0 : i32
    return %arg1, %c0_i32, %c0_i32_0 : i32, i32, i32
  }
  func.func @transform_2(%arg0: i32, %arg1: i32) -> (i32, i32, i32) {
    %c0_i32 = arith.constant 0 : i32
    %c0_i32_0 = arith.constant 0 : i32
    %c0_i32_1 = arith.constant 0 : i32
    return %arg1, %c0_i32, %c0_i32_0 : i32, i32, i32
  }
  func.func @transform_3(%arg0: i32, %arg1: i32) -> (i32, i32, i32, i32) {
    %c0_i32 = arith.constant 0 : i32
    %c0_i32_0 = arith.constant 0 : i32
    %c0_i32_1 = arith.constant 0 : i32
    return %arg0, %arg1, %c0_i32, %c0_i32_0 : i32, i32, i32, i32
  }
}

</mosaic_0001>

<bundles_post_ra>
// kernel: tpu_custom_call.1
= control target key start
LH: loop header
LB: loop body
LE: loop exit
PB: predicated region body
PF: predicated region fallthrough
CT: control target
= control target key end

     0   :  { %8 = vsyncpa [#allocation3], 0  ;;  %s984_s0 = inlined_call_operand.hbm [shape: f32[2,2,2,256], index: 0, kind: input, shape index: {}]   ;;  %s985_s1 = inlined_call_operand.vmem [shape: f32[2,2,1], index: 1, kind: input, shape index: {}]   ;;  %s986_s2 = inlined_call_operand.vmem [shape: f32[2,2,1], index: 2, kind: input, shape index: {}]   ;;  %s987_s3 = inlined_call_operand.hbm [shape: bf16[2,2,2,256], index: 3, kind: output, shape index: {}]  }
   0x1   :  { %10 = vsyncpa [#allocation3 + $0x1], 0 }
   0x2   :  { %11 = vsyncpa [#allocation4], 0 }
   0x3   :  { %13 = vsyncpa [#allocation4 + $0x1], 0  ;;  %s765_s12 = smov 0   ;;  %s767_s13 = smov 0  }
   0x4   :  { %s769_s14 = smov 0   ;;  %s771_s15 = smov 0  }
   0x5   :  { %s773_s16 = smov 0   ;;  %s775_s17 = smov 0  }
   0x6   :  { %s777_s18 = smov 0   ;;  %s779_s19 = smov 0  }
   0x7 LB: > { %s494_s20 = sadd.s32 4294967295, %s736_s19   ;;  %s495_s21 = sadd.s32 4294967294, %s736_s19   ;;  %s736_s19 = sphi %s779_s19, %s19_s19   ;;  %s732_s18 = sphi %s777_s18, %s1004_s18   ;;  %s728_s17 = sphi %s775_s17, %s1003_s17   ;;  %s724_s16 = sphi %s773_s16, %s1002_s16   ;;  %s720_s15 = sphi %s771_s15, %s1001_s15   ;;  %s716_s14 = sphi %s769_s14, %s1000_s14   ;;  %s712_s13 = sphi %s767_s13, %s999_s13   ;;  %s708_s12 = sphi %s765_s12, %s998_s12  }
   0x8   : > { %s28_s22 = sadd.s32 1, %s728_s17  ;;  %s31_s23 = sadd.s32 1, %s732_s18 }
   0x9   : > { %p29_p0 = scmp.ge.s32.totalorder %s28_s22, 2  ;;  %s40_s24 = sadd.s32 1, %s716_s14 }
   0xa   : > { %p47_p1 = scmp.ne.s32.totalorder %s716_s14, %s712_s13  ;;  %p48_p2 = scmp.eq.s32.totalorder %s736_s19, 0 }
   0xb   : > { %s1006_s22 = smov (%p29_p0, %s28_s22), 0  ;;  %s1008_s23 = smov (!%p29_p0, %s31_s23), %s732_s18 }
   0xc   : > { %s36_s25 = ssub.s32 %s728_s17, %s1006_s22  ;;  %p818_p3 = por %p48_p2, %p47_p1 }
   0xd   : > { %p33_p4 = scmp.ge.s32.totalorder %s1008_s23, 2  ;;  %p53_p5 = scmp.ne.s32.totalorder %s712_s13, %s708_s12 }
   0xe   : > { %p54_p6 = scmp.eq.s32.totalorder %s494_s20, 0  ;;  %p131_p7 = scmp.eq.s32.totalorder %s494_s20, 3 }
   0xf   : > { %s1010_s23 = smov (%p33_p4, %s1008_s23), 0  ;;  %p137_p10 = scmp.eq.s32.totalorder %s495_s21, 3 }
  0x10   : > { %p826_p8 = por %p54_p6, %p53_p5  ;;  %p830_p9 = por %p131_p7, %p47_p1 }
  0x11   : > { %s35_s29 = ssub.s32 %s732_s18, %s1010_s23  ;;  %p836_p12 = por %p137_p10, %p53_p5 }
  0x12   : > { %s991_s28 = scalar_select %p830_p9, 1, 0 }
  0x13   : > { %s37_s30 = sor.u32 %s36_s25, %s35_s29  ;;  %p533_p13 = scmp.lt.s32.totalorder %s736_s19, 4 }
  0x14   : > { %p38_p11 = scmp.eq.s32.totalorder %s37_s30, 0  ;;  %s157_s5 = sand.u32 1, %s716_s14  }
  0x15   : > { %s992_s4 = scalar_select %p836_p12, 1, 0 }
  0x16   : > { %s843_s6 = scalar_select %p38_p11, %s716_s14, %s40_s24  }
  0x17   : > { %s498_s7 = sshll.u32 %s157_s5, 2  ;;  %s499_s8 = sshll.u32 %s728_s17, 1 }
  0x18   : > { %s500_s9 = sshll.u32 %s732_s18, 2  ;;  %s161_s10 = scalar_lea.vmem [#allocation2], %s498_s7 }
  0x19   : > { %s171_s11 = sshll.u32 %s161_s10, 4  ;;  %s167_s20 = sadd.s32 %s500_s9, %s499_s8  ;;  %s847_s11 = int_to_ptr.vmem [resolvable:$true] %s171_s11 }
  0x1a   : > { %s501_s21 = sshll.u32 %s167_s20, 5  ;;  %p851_p0 = pnand %p533_p13, %p818_p3 }
  0x1b   : > { %s858_s24 = scalar_lea.hbm %s984_s0, %s501_s21  ;;  %s158_s7 = scalar_lea.sflag [#allocation3], %s157_s5 }
  0x1c   : > { %s608_s8 = scalar_lea.hbm %s858_s24, 64  ;;  %p610_p3 = pneg %p851_p0 }
  0x1d   : > { %p609_p4 = scmp.ne.s32.totalorder %s858_s24, %s608_s8  ;;  %s613_s10 = scalar_lea.hbm %s984_s0, 256 }
  0x1e   : > { %p614_p7 = scmp.lt.u32.totalorder %s858_s24, %s984_s0  ;;  %p615_p10 = scmp.lt.u32.totalorder %s613_s10, %s608_s8 }
  0x1f   : > { %p611_p5 = pnand %p610_p3, %p609_p4  ;;  %p617_p13 = scmp.lt.u32.totalorder %s608_s8, %s858_s24 }
  0x20   : > { %p616_p11 = por %p615_p10, %p614_p7 }
  0x21   : > { %p612_p6 = pneg %p611_p5 }
  0x22   : > { %p618_p1 = por %p617_p13, %p616_p11 }
  0x24   : > { %p619_p2 = pnand %p618_p1, %p612_p6 }
  0x26   : > { %622 = shalt.err (!%p619_p2)
}
  0x27   : > { %s623_s5 = scalar_lea.vmem %s847_s11, 64  ;;  %s738_s29 = smov [#allocation2]  }
  0x28   : > { %p624_p4 = scmp.ne.s32.totalorder %s847_s11, %s623_s5  ;;  %s628_s30 = sshll.u32 %s738_s29, 4  ;;  %s629_s30 = int_to_ptr.vmem [resolvable:$false] %s628_s30 }
  0x29   : > { %s630_s26 = scalar_lea.vmem %s629_s30, 128  ;;  %p631_p9 = scmp.lt.s32.totalorder %s847_s11, %s629_s30 }
  0x2a   : > { %p626_p5 = pnand %p624_p4, %p610_p3  ;;  %p632_p7 = scmp.lt.s32.totalorder %s630_s26, %s623_s5 }
  0x2c   : > { %p627_p12 = pneg %p626_p5  ;;  %p633_p10 = por %p632_p7, %p631_p9 }
  0x2e   : > { %p634_p11 = pnand %p633_p10, %p627_p12 }
  0x30   : > { %637 = shalt.err (!%p634_p11)
}
  0x31   : > { %528 = dma.hbm_to_vmem [thread:$0]  (!%p851_p0), %s858_s24, 64, %s847_s11, %s158_s7  }
  0x32   : > { %p994_p1 = scmp.lt.s32.totalorder %s736_s19, 5  ;;  %p995_p2 = scmp.ge.s32.totalorder %s736_s19, 1 }
  0x34   : > { %p191_p3 = pnand %p995_p2, %p994_p1 }
  0x35   : > { %s892_s8 = sand.u32 (!%p191_p3), 1, %s712_s13  }
  0x36   : > { %194 = sbr.rel (%p191_p3) target bundleno = 384 (0x180), region = 32  ;;  %s503_s9 = sshll.u32 (!%p191_p3), %s892_s8, 2 }
  0x37   : > { %s197_s10 = scalar_lea.sflag (!%p191_p3), [#allocation3], %s892_s8  ;;  %s200_s20 = scalar_lea.vmem (!%p191_p3), [#allocation2], %s503_s9 }
  0x3d   : > { %699 = dma.done.wait (%p826_p8), %s197_s10, 64  }
  0x3e   : > { %701 = vsyncadd (%p826_p8), %s197_s10, 4294967232  ;;  %v244_v0 = vlaneseq  ;;  %v739_v1 = vmov 1983009808   ;;  %v905_v6 = vld [vmem:[%s200_s20] sm:$0xf]  ;;  %vm251_vm0 = vcmask 1041408  }
  0x3f   : > { %v242_v2 = vunpack.c.l.s4 %v739_v1  ;;  %v264_v8 = vmul.f32 %v905_v6, %v905_v6  ;;  %p231_p8 = scmp.lt.s32.totalorder %s720_s15, 1  ;;  %v740_v18 = vmov 0   ;;  %v742_v37 = vmov 269488144   ;;  %s504_s21 = sshll.u32 %s892_s8, 1 }
  0x40   : > { %v900_v3 = vshrl.u32 %v244_v0, 7  ;;  %604 = vset.pattern.permute.xlu1 %v740_v18  ;;  %605 = vset.pattern.permute.xlu0 %v740_v18  ;;  %v311_v38 = vunpack.c.l.s4 %v742_v37  ;;  %v743_v50 = vmov 1966171168   ;;  %s510_s5 = sshll.u32 %s720_s15, 1  ;;  %p996_p12 = scmp.ne.s32.totalorder %s991_s28, 0 }
  0x41   : > { %v243_v4 = vunpack.c.0.s8 %v242_v2  ;;  %s232_s27 = scalar_select %p231_p8, %s720_s15, 1  ;;  %v351_v51 = vunpack.c.l.s4 %v743_v50 }
  0x42   : > { %v312_v39 = vunpack.c.0.s8 %v311_v38 }
  0x43   : > { %v903_v5 = vsub.s32 %v243_v4, %v900_v3  ;;  %s505_s11 = sshll.u32 %s232_s27, 1  ;;  %v352_v54 = vunpack.c.0.s8 %v351_v51 }
  0x44   : > { %s234_s7 = scalar_lea.vmem %s985_s1, %s505_s11  ;;  %s238_s29 = scalar_lea.vmem %s986_s2, %s505_s11  ;;  %v315_v42 = vsub.s32 %v312_v39, %v900_v3 }
  0x45   : > { %v247_v7 = vrot.slane %v905_v6, %v903_v5  ;;  %v272_v11 = vrot.slane %v264_v8, %v903_v5  ;;  %v305_v19 = vld [vmem:[%s234_s7] sm:$0x3]  ;;  %s741_s11 = smov 0.0   ;;  %v355_v57 = vsub.s32 %v352_v54, %v900_v3 }
  0x46   : > { %308 = vperm.xlu1 %604, %v305_v19   ;;  %v319_v20 = vld [vmem:[%s238_s29] sm:$0x3]  ;;  %s511_s29 = sshll.u32 %s724_s16, 2  ;;  %s367_s16 = scalar_lea.sflag [#allocation4], %s892_s8 }
  0x47   : > { %v248_v9 = vcombine.high %v247_v7, %v247_v7  ;;  %v252_v10 = vsel %vm251_vm0, %v247_v7, 0.0  ;;  %v273_v13 = vcombine.high %v272_v11, %v272_v11  ;;  %v276_v14 = vsel %vm251_vm0, %v272_v11, 0.0 }
  0x49   : > { %v253_v12 = vsel %vm251_vm0, %v248_v9, 0.0  ;;  %v277_v16 = vsel %vm251_vm0, %v273_v13, 0.0 }
  0x4a   : > { %v254_v15 = vadd.f32 %v253_v12, %v252_v10  ;;  %v278_v17 = vadd.f32 %v277_v16, %v276_v14  ;;  %322 = vperm.xlu1 %604, %v319_v20  }
  0x4c   : > { %255 = vadd.xlane.f32.xlu0 %v254_v15 }
  0x50   : > { %279 = vadd.xlane.f32.xlu0 %v278_v17 }
  0xc5   : > { %v309_v40 = vpop.permute.xlu1 %308 }
  0xc6   : > { %v316_v46 = vrot.slane %v309_v40, %v315_v42 }
  0xc9   : > { %v323_v44 = vpop.permute.xlu1 %322 }
  0xca   : > { %v330_v48 = vrot.slane %v323_v44, %v315_v42 }
  0xd9   : > { %v256_v21 = vpop.xlane.xlu0 %255 }
  0xda   : > { %v257_v22 = vrot.slane %v256_v21, 4 }
  0xdc   : > { %v258_v23 = vadd.f32 %v257_v22, %v256_v21 }
  0xdd   : > { %v280_v24 = vpop.xlane.xlu0 %279 }
  0xde   : > { %v259_v25 = vrot.slane %v258_v23, 2  ;;  %v281_v26 = vrot.slane %v280_v24, 4 }
  0xe0   : > { %v282_v27 = vadd.f32 %v281_v26, %v280_v24  ;;  %v260_v28 = vadd.f32 %v259_v25, %v258_v23 }
  0xe2   : > { %v283_v29 = vrot.slane %v282_v27, 2  ;;  %v261_v30 = vrot.slane %v260_v28, 1 }
  0xe4   : > { %v284_v31 = vadd.f32 %v283_v29, %v282_v27  ;;  %v262_v32 = vadd.f32 %v261_v30, %v260_v28 }
  0xe6   : > { %515 = vpush %v262_v32  ;;  %v285_v33 = vrot.slane %v284_v31, 1 }
  0xe8   : > { %v286_v34 = vadd.f32 %v285_v33, %v284_v31 }
  0xea   : > { %517 = vpush %v286_v34 }
 0x117   : > { %s516_s30 = spop %515 }
 0x118   : > { %s290_s26 = smul.f32 0.001953125, %s516_s30  ;;  %s379_s30 = sadd.s32 %s511_s29, %s510_s5 }
 0x11a   : > { %s294_s9 = smul.f32 %s290_s26, %s290_s26  ;;  %v301_v41 = vstv %s290_s26  ;;  %s512_s26 = sshll.u32 %s379_s30, 4 }
 0x11b   : > { %s518_s10 = spop %517  ;;  %v302_v43 = vsub.f32 %v905_v6, %v301_v41  ;;  %s930_s15 = scalar_lea.hbm %s987_s3, %s512_s26 }
 0x11c   : > { %s293_s20 = smul.f32 0.001953125, %s518_s10 }
 0x11e   : > { %s295_s27 = ssub.f32 %s293_s20, %s294_s9  ;;  %s230_s9 = scalar_lea.vmem [#allocation5], %s504_s21 }
 0x11f   : > { %s383_s10 = sshll.u32 %s230_s9, 4  ;;  %s932_s10 = int_to_ptr.vmem [resolvable:$true] %s383_s10 }
 0x120   : > { %s296_s25 = smax.f32 %s741_s11, %s295_s27  ;;  %s638_s11 = scalar_lea.vmem %s932_s10, 32 }
 0x121   : > { %s297_s24 = sadd.f32 1e-05, %s296_s25  ;;  %p639_p9 = scmp.ne.s32.totalorder %s932_s10, %s638_s11 }
 0x122   : > { %s744_s25 = smov [#allocation5]  }
 0x123   : > { %v298_v35 = vstv %s297_s24  ;;  %p640_p0 = pnand %p639_p9, %p996_p12  ;;  %s642_s24 = sshll.u32 %s744_s25, 4  ;;  %s643_s24 = int_to_ptr.vmem [resolvable:$false] %s642_s24 }
 0x124   : > { %606 = vrsqrt.f32 %v298_v35  ;;  %p645_p13 = scmp.lt.s32.totalorder %s932_s10, %s643_s24 }
 0x125   : > { %p641_p6 = pneg %p640_p0 }
 0x12e   : > { %v607_v36 = vpop.eup %606 }
 0x12f   : > { %519 = vpush %v607_v36 }
 0x160   : > { %s520_s7 = spop %519 }
 0x161   : > { %v303_v45 = vstv %s520_s7  ;;  %s644_s7 = scalar_lea.vmem %s643_s24, 64 }
 0x162   : > { %v304_v47 = vmul.f32 %v303_v45, %v302_v43  ;;  %p646_p4 = scmp.lt.s32.totalorder %s644_s7, %s638_s11 }
 0x164   : > { %v318_v49 = vmul.f32 %v316_v46, %v304_v47  ;;  %p647_p5 = por %p646_p4, %p645_p13 }
 0x166   : > { %v332_v52 = vadd.f32 %v330_v48, %v318_v49  ;;  %p648_p7 = pnand %p647_p5, %p641_p6 }
 0x168   : > { %v333_v53 = vmax.f32 %v332_v52, 0.0 }
 0x16a   : > { %v341_v55 = vrot.slane %v333_v53, %v903_v5 }
 0x16c   : > { %v342_v56 = vcombine.high %v341_v55, %v341_v55 }
 0x16e   : > { %v507_v58 = vpack.c.bf16 %v342_v56, %v341_v55 }
 0x170   : > { %v356_v59 = vrot.slane %v507_v58, %v355_v57 }
 0x172   : > { %508 = vst.sshfl [vmem:[%s230_s9] sm:$0x5 pattern:$0x73625140] %v356_v59 }
 0x173   : > { %651 = shalt.err (!%p648_p7)
}
 0x174   : > { %s652_s8 = scalar_lea.hbm %s930_s15, 32  ;;  %s656_s29 = scalar_lea.hbm %s987_s3, 128 }
 0x175   : > { %p653_p10 = scmp.ne.s32.totalorder %s930_s15, %s652_s8  ;;  %p657_p2 = scmp.lt.u32.totalorder %s930_s15, %s987_s3 }
 0x176   : > { %p658_p3 = scmp.lt.u32.totalorder %s656_s29, %s652_s8  ;;  %p660_p9 = scmp.lt.u32.totalorder %s652_s8, %s930_s15 }
 0x177   : > { %p654_p11 = pnand %p653_p10, %p996_p12 }
 0x178   : > { %p659_p8 = por %p658_p3, %p657_p2 }
 0x179   : > { %p655_p1 = pneg %p654_p11 }
 0x17a   : > { %p661_p0 = por %p660_p9, %p659_p8 }
 0x17c   : > { %p662_p6 = pnand %p661_p0, %p655_p1 }
 0x17e   : > { %665 = shalt.err (!%p662_p6)
}
 0x17f   : > { %523 = dma.vmem_to_hbm [thread:$0]  (%p996_p12), %s932_s10, 32, %s930_s15, %s367_s16  }
 0x180 PF: > { %p534_p13 = scmp.ge.s32.totalorder %s736_s19, 2  ;;  %s395_s9 = sand.u32 1, %s708_s12  }
 0x181   : > { %p997_p4 = scmp.ne.s32.totalorder %s992_s4, 0  ;;  %s396_s20 = scalar_lea.sflag [#allocation4], %s395_s9 }
 0x183   : > { %p530_p5 = pnand %p534_p13, %p997_p4 }
 0x185   : > { %703 = dma.done.wait (!%p530_p5), %s396_s20, 32  }
 0x186   : > { %705 = vsyncadd (!%p530_p5), %s396_s20, 4294967264  ;;  %s19_s19 = sadd.s32 1, %s736_s19   ;;  %s998_s12 = smov %s712_s13 }
 0x187   : > { %p16_p7 = scmp.ge.s32.totalorder %s19_s19, 6   ;;  %s999_s13 = smov %s716_s14 }
 0x188   : > { %s1000_s14 = smov %s843_s6  ;;  %s1001_s15 = smov %s728_s17 }
 0x189   : > { %s1002_s16 = smov %s732_s18  ;;  %s1003_s17 = smov %s1006_s22 }
 0x18a   : > { %s1004_s18 = smov %s1010_s23  ;;  %18 = sbr.rel (!%p16_p7) target bundleno = 7 (0x7), region = 83 }
 0x191   :  { %401 = vsyncpa [#allocation3], 1 }
 0x192   :  { %403 = vsyncpa [#allocation3 + $0x1], 1 }
 0x193   :  { %404 = vsyncpa [#allocation4], 1 }
 0x194   :  { %406 = vsyncpa [#allocation4 + $0x1], 1 }

</bundles_post_ra>
